<compile_context>
chip_gen: v7x
topology: tpu7x:2x2x1
jax: 0.10.0
libtpu: 0.0.40
codegen_flags: <defaults>
</compile_context>

<pallas_src>
import jax
import jax.numpy as jnp
from jax import lax
from jax.experimental import pallas as pl
from jax.experimental.pallas import tpu as pltpu


def _round_up(x: int, m: int) -> int:
    return (x + m - 1) // m * m


def _pick_tile_m(n_neurons: int, n_samples: int) -> int:
    """Sample-axis tile: >=512 lanes when possible, bounded by VMEM (v7x 64 MiB)."""
    tile = 512 if n_samples >= 512 else _round_up(max(n_samples, 1), 128)
    # Keep the double-buffered X tile comfortably inside scoped VMEM.
    while tile > 128 and n_neurons * tile * 4 * 2 > (24 << 20):
        tile = _round_up(tile // 2, 128)
    return tile


def _reduced_rank_kernel(m_ref, inv_ref, u_ref, v_ref, b_ref, x_ref, o_ref, t_acc):
    """One grid step = one (N, tile_M) slab of X reduced into a (1, R) accumulator."""
    k = pl.program_id(0)
    tile_m = x_ref.shape[1]

    @pl.when(k == 0)
    def _init():
        t_acc[...] = jnp.zeros_like(t_acc)

    # Mask columns beyond the true n_samples in the (possibly partial) last tile.
    n_valid = m_ref[0] - k * tile_m                                   # scalar int32 (SMEM)
    col = lax.broadcasted_iota(jnp.int32, x_ref.shape, 1)
    x = jnp.where(col < n_valid, x_ref[...], 0.0)

    # Reduce over samples first (cheap cross-lane reduce), then contract over
    # neurons without materializing a transposed copy:  t = xs^T @ U -> (1, R).
    xs = jnp.sum(x, axis=1, keepdims=True)                            # (N, 1)
    t_part = lax.dot_general(
        xs, u_ref[...],
        dimension_numbers=(((0,), (0,)), ((), ())),
        preferred_element_type=jnp.float32,
    )                                                                 # (1, R)
    # Per-tile 1/M scaling (SMEM scalar) keeps the accumulator magnitude bounded.
    t_acc[...] += t_part * inv_ref[0]

    @pl.when(k == pl.num_programs(0) - 1)
    def _finalize():
        # y = t @ V -> (1, T_pad): lane-dense output write.
        y = lax.dot_general(
            t_acc[...], v_ref[...],
            dimension_numbers=(((1,), (0,)), ((), ())),
            preferred_element_type=jnp.float32,
        )
        o_ref[...] = (y + b_ref[...]).astype(o_ref.dtype)


def reduced_rank_forward(U, V_pad, bias_pad, X):
    """Run the Pallas kernel for one recording.

    U: (N, R) unpadded, V_pad: (R, T_pad), bias_pad: (1, T_pad), X: (N, M) unpadded.
    Returns (1, T_pad); caller slices back to (T,).
    """
    N, M = X.shape
    Nu, R = U.shape
    assert Nu == N, "U and X must share the neuron dimension"
    T_pad = V_pad.shape[1]

    tile_m = _pick_tile_m(N, M)
    num_tiles = pl.cdiv(M, tile_m)

    # Runtime scalars in SMEM (not baked into the binary).
    m_i32 = jnp.array([M], dtype=jnp.int32)
    inv_m = jnp.array([1.0 / M], dtype=jnp.float32)

    # Explicit VMEM budget: 2 buffers for the streamed X tile + resident params,
    # with headroom; capped at 64 MiB so it is valid on v7x as well as v5e/v6e.
    x_tile_bytes = N * tile_m * 4
    fixed_bytes = (N * R + R * T_pad + 2 * T_pad + 8 * 128) * 4
    vmem_limit = int(min(max(4 * x_tile_bytes + 2 * fixed_bytes + (2 << 20), 8 << 20),
                         64 << 20))

    cost = pl.CostEstimate(
        flops=2 * N * M + 2 * N * R * num_tiles + 2 * R * T_pad,
        transcendentals=0,
        bytes_accessed=(N * M + N * R + R * T_pad + 2 * T_pad) * 4,
    )

    smem_spec = pl.BlockSpec(memory_space=pltpu.MemorySpace.SMEM)
    out = pl.pallas_call(
        _reduced_rank_kernel,
        out_shape=jax.ShapeDtypeStruct((1, T_pad), jnp.float32),
        grid=(num_tiles,),
        in_specs=[
            smem_spec,                                      # n_samples (int32 scalar)
            smem_spec,                                      # 1/n_samples (f32 scalar)
            pl.BlockSpec((N, R), lambda k: (0, 0)),         # U, VMEM-resident
            pl.BlockSpec((R, T_pad), lambda k: (0, 0)),     # V, VMEM-resident
            pl.BlockSpec((1, T_pad), lambda k: (0, 0)),     # bias, VMEM-resident
            pl.BlockSpec((N, tile_m), lambda k: (0, k)),    # X streamed over samples
        ],
        out_specs=pl.BlockSpec((1, T_pad), lambda k: (0, 0)),
        scratch_shapes=[pltpu.VMEM((1, R), jnp.float32)],   # (1, R) accumulator
        compiler_params=pltpu.CompilerParams(
            dimension_semantics=("arbitrary",),             # M axis is a reduction
            vmem_limit_bytes=vmem_limit,
        ),
        cost_estimate=cost,
    )(m_i32, inv_m, U, V_pad, bias_pad, X)
    return out


class ReducedRankModelPallas:
    """JAX/Pallas port of ReducedRankModel (forward only). Params init with randn."""

    def __init__(self, n_recordings, n_neurons_per_recording, n_time_bins, rank, key):
        self.n_recordings = n_recordings
        self.n_neurons_per_recording = list(n_neurons_per_recording)
        self.n_time_bins = n_time_bins
        self.rank = rank
        self.t_pad = _round_up(n_time_bins, 128)

        keys = jax.random.split(key, n_recordings + 2)
        # Raw (unpadded) parameters — same roles as the PyTorch nn.Parameters.
        self.Us = [
            jax.random.normal(keys[i], (self.n_neurons_per_recording[i], rank), jnp.float32)
            for i in range(n_recordings)
        ]
        self.V = jax.random.normal(keys[n_recordings], (rank, n_time_bins), jnp.float32)
        self.bias = jax.random.normal(keys[n_recordings + 1], (n_time_bins,), jnp.float32)

        # Time axis padded to a lane-dense multiple of 128 (tiny params; no X pad).
        self.V_pad = jnp.pad(self.V, ((0, 0), (0, self.t_pad - n_time_bins)))       # (R, T_pad)
        self.bias_pad = jnp.pad(self.bias, (0, self.t_pad - n_time_bins))[None, :]  # (1, T_pad)

    def __call__(self, recording_index, recording_X):
        # recording_index is a Python int -> static selection; at most n_recordings
        # kernel specializations (one per distinct neuron count).
        y_pad = reduced_rank_forward(
            self.Us[recording_index], self.V_pad, self.bias_pad, recording_X
        )
        return y_pad[0, : self.n_time_bins]

    # TODO(synk): batched (many-trials) entry point — stack X as (B, N, M) and add a
    # "parallel" batch grid axis (also feeds both v7x TensorCores) to amortize the
    # per-call launch overhead; the spec's forward is strictly per-recording, so it
    # is not implemented here.  Likewise bf16 X/U streaming (f32 accumulate) would
    # halve HBM bytes but changes numerics vs the f32 reference.


if __name__ == "__main__":
    key = jax.random.PRNGKey(0)
    k_params, k_x0, k_x1, k_x2 = jax.random.split(key, 4)

    n_recordings = 2
    n_neurons_per_recording = [32, 16]
    n_time_bins = 24
    rank = 4

    model = ReducedRankModelPallas(
        n_recordings, n_neurons_per_recording, n_time_bins, rank, k_params
    )

    # (recording_index, n_samples, key):
    #  - small M exercises the masked partial tile,
    #  - M=700 exercises the multi-tile grid reduction (tile_M=512, 2 steps).
    cases = [(0, 8, k_x0), (1, 8, k_x1), (0, 700, k_x2)]

    ok = True
    for rec_idx, n_samples, kx in cases:
        X = jax.random.normal(
            kx, (n_neurons_per_recording[rec_idx], n_samples), jnp.float32
        )
        y_hat = jax.block_until_ready(model(rec_idx, X))

        # Pure-JAX reference (identical math to the PyTorch forward).
        U = model.Us[rec_idx]
        y_ref = jnp.mean((U @ model.V).T @ X, axis=1) + model.bias

        ok &= y_hat.shape == (n_time_bins,)
        ok &= bool(jnp.allclose(y_hat, y_ref, atol=1e-4, rtol=1e-4))

    assert ok
    print("KERNEL_OK")
</pallas_src>

<mosaic_0001>
module attributes {stable_mosaic.version = 11 : i64} {
  func.func @_reduced_rank_kernel(%arg0: i32, %arg1: memref<1xi32, #tpu.memory_space<smem>>, %arg2: memref<1xf32, #tpu.memory_space<smem>>, %arg3: memref<32x4xf32, #tpu.memory_space<vmem>>, %arg4: memref<4x128xf32, #tpu.memory_space<vmem>>, %arg5: memref<1x128xf32, #tpu.memory_space<vmem>>, %arg6: memref<32x128xf32, #tpu.memory_space<vmem>>, %arg7: memref<1x128xf32, #tpu.memory_space<vmem>>, %arg8: memref<1x4xf32, #tpu.memory_space<vmem>>) attributes {dimension_semantics = [#tpu.dimension_semantics<arbitrary>], iteration_bounds = array<i64: 1>, scalar_prefetch = 0 : i64, scratch_operands = 1 : i64, tpu.core_type = #tpu.core_type<tc>, window_params = [{transform_indices = @transform_0, window_bounds = array<i64: 1>}, {transform_indices = @transform_1, window_bounds = array<i64: 1>}, {pipeline_mode = #tpu.pipeline_mode<synchronous>, transform_indices = @transform_2, window_bounds = array<i64: 32, 4>}, {pipeline_mode = #tpu.pipeline_mode<synchronous>, transform_indices = @transform_3, window_bounds = array<i64: 4, 128>}, {pipeline_mode = #tpu.pipeline_mode<synchronous>, transform_indices = @transform_4, window_bounds = array<i64: 1, 128>}, {transform_indices = @transform_5, window_bounds = array<i64: 32, 128>}, {pipeline_mode = #tpu.pipeline_mode<synchronous>, transform_indices = @transform_6, window_bounds = array<i64: 1, 128>}]} {
    %c0_i32 = arith.constant 0 : i32
    %0 = arith.cmpi eq, %arg0, %c0_i32 : i32
    %1 = arith.extui %0 : i1 to i32
    %c0_i32_0 = arith.constant 0 : i32
    %2 = arith.cmpi ne, %1, %c0_i32_0 : i32
    scf.if %2 {
      %cst_14 = arith.constant 0.000000e+00 : f32
      %25 = vector.broadcast %cst_14 : f32 to vector<1x4xf32>
      %c0_15 = arith.constant 0 : index
      %c0_16 = arith.constant 0 : index
      %26 = vector.load %arg8[%c0_15, %c0_16] : memref<1x4xf32, #tpu.memory_space<vmem>>, vector<1x4xf32>
      tpu.vector_store %arg8[%c0_15, %c0_16], %25 {strides = array<i32>} : memref<1x4xf32, #tpu.memory_space<vmem>>, vector<1x4xf32>,
    } else {
    }
    %c0 = arith.constant 0 : index
    %3 = memref.load %arg1[%c0] : memref<1xi32, #tpu.memory_space<smem>>
    %c128_i32 = arith.constant 128 : i32
    %4 = arith.muli %arg0, %c128_i32 : i32
    %5 = arith.subi %3, %4 : i32
    %6 = tpu.iota {dimensions = array<i32: 1>} : vector<32x128xi32>
    %7 = vector.broadcast %5 : i32 to vector<32x128xi32>
    %8 = arith.cmpi slt, %6, %7 : vector<32x128xi32>
    %c0_1 = arith.constant 0 : index
    %c0_2 = arith.constant 0 : index
    %9 = vector.load %arg6[%c0_1, %c0_2] : memref<32x128xf32, #tpu.memory_space<vmem>>, vector<32x128xf32>
    %cst = arith.constant 0.000000e+00 : f32
    %10 = vector.broadcast %cst : f32 to vector<32x128xf32>
    %11 = arith.select %8, %9, %10 : vector<32x128xi1>, vector<32x128xf32>
    %cst_3 = arith.constant dense<0.000000e+00> : vector<32xf32>
    %12 = vector.multi_reduction <add>, %11, %cst_3 [1] : vector<32x128xf32> to vector<32xf32>
    %13 = vector.shape_cast %12 : vector<32xf32> to vector<32x1xf32>
    %c0_4 = arith.constant 0 : index
    %c0_5 = arith.constant 0 : index
    %14 = vector.load %arg3[%c0_4, %c0_5] : memref<32x4xf32, #tpu.memory_space<vmem>>, vector<32x4xf32>
    %cst_6 = arith.constant dense<0.000000e+00> : vector<1x4xf32>
    %15 = tpu.matmul %13, %14, %cst_6 {dimension_numbers = #tpu.dot_dimension_numbers<[0], [0], [1], [1], [0, 1, 1, 1], [], []>} : vector<32x1xf32>, vector<32x4xf32>, vector<1x4xf32> -> vector<1x4xf32>
    %c0_7 = arith.constant 0 : index
    %c0_8 = arith.constant 0 : index
    %16 = vector.load %arg8[%c0_7, %c0_8] : memref<1x4xf32, #tpu.memory_space<vmem>>, vector<1x4xf32>
    %c0_9 = arith.constant 0 : index
    %17 = memref.load %arg2[%c0_9] : memref<1xf32, #tpu.memory_space<smem>>
    %18 = vector.broadcast %17 : f32 to vector<1x4xf32>
    %19 = arith.mulf %15, %18 : vector<1x4xf32>
    %20 = arith.addf %16, %19 : vector<1x4xf32>
    %c0_10 = arith.constant 0 : index
    %c0_11 = arith.constant 0 : index
    %21 = vector.load %arg8[%c0_10, %c0_11] : memref<1x4xf32, #tpu.memory_space<vmem>>, vector<1x4xf32>
    tpu.vector_store %arg8[%c0_10, %c0_11], %20 {strides = array<i32>} : memref<1x4xf32, #tpu.memory_space<vmem>>, vector<1x4xf32>,
    %c0_i32_12 = arith.constant 0 : i32
    %22 = arith.cmpi eq, %arg0, %c0_i32_12 : i32
    %23 = arith.extui %22 : i1 to i32
    %c0_i32_13 = arith.constant 0 : i32
    %24 = arith.cmpi ne, %23, %c0_i32_13 : i32
    scf.if %24 {
      %c0_14 = arith.constant 0 : index
      %c0_15 = arith.constant 0 : index
      %25 = vector.load %arg8[%c0_14, %c0_15] : memref<1x4xf32, #tpu.memory_space<vmem>>, vector<1x4xf32>
      %c0_16 = arith.constant 0 : index
      %c0_17 = arith.constant 0 : index
      %26 = vector.load %arg4[%c0_16, %c0_17] : memref<4x128xf32, #tpu.memory_space<vmem>>, vector<4x128xf32>
      %cst_18 = arith.constant dense<0.000000e+00> : vector<1x128xf32>
      %27 = tpu.matmul %25, %26, %cst_18 {dimension_numbers = #tpu.dot_dimension_numbers<[1], [0], [0], [1], [0, 0, 1, 1], [], []>} : vector<1x4xf32>, vector<4x128xf32>, vector<1x128xf32> -> vector<1x128xf32>
      %c0_19 = arith.constant 0 : index
      %c0_20 = arith.constant 0 : index
      %28 = vector.load %arg5[%c0_19, %c0_20] : memref<1x128xf32, #tpu.memory_space<vmem>>, vector<1x128xf32>
      %29 = arith.addf %27, %28 : vector<1x128xf32>
      %c0_21 = arith.constant 0 : index
      %c0_22 = arith.constant 0 : index
      %30 = vector.load %arg7[%c0_21, %c0_22] : memref<1x128xf32, #tpu.memory_space<vmem>>, vector<1x128xf32>
      tpu.vector_store %arg7[%c0_21, %c0_22], %29 {strides = array<i32>} : memref<1x128xf32, #tpu.memory_space<vmem>>, vector<1x128xf32>,
    } else {
    }
    return
  }
  func.func @transform_0(%arg0: i32) -> i32 {
    %c0_i32 = arith.constant 0 : i32
    %c0_i32_0 = arith.constant 0 : i32
    return %c0_i32 : i32
  }
  func.func @transform_1(%arg0: i32) -> i32 {
    %c0_i32 = arith.constant 0 : i32
    %c0_i32_0 = arith.constant 0 : i32
    return %c0_i32 : i32
  }
  func.func @transform_2(%arg0: i32) -> (i32, i32) {
    %c0_i32 = arith.constant 0 : i32
    %c0_i32_0 = arith.constant 0 : i32
    %c0_i32_1 = arith.constant 0 : i32
    return %c0_i32, %c0_i32_0 : i32, i32
  }
  func.func @transform_3(%arg0: i32) -> (i32, i32) {
    %c0_i32 = arith.constant 0 : i32
    %c0_i32_0 = arith.constant 0 : i32
    %c0_i32_1 = arith.constant 0 : i32
    return %c0_i32, %c0_i32_0 : i32, i32
  }
  func.func @transform_4(%arg0: i32) -> (i32, i32) {
    %c0_i32 = arith.constant 0 : i32
    %c0_i32_0 = arith.constant 0 : i32
    %c0_i32_1 = arith.constant 0 : i32
    return %c0_i32, %c0_i32_0 : i32, i32
  }
  func.func @transform_5(%arg0: i32) -> (i32, i32) {
    %c0_i32 = arith.constant 0 : i32
    %c0_i32_0 = arith.constant 0 : i32
    return %c0_i32, %arg0 : i32, i32
  }
  func.func @transform_6(%arg0: i32) -> (i32, i32) {
    %c0_i32 = arith.constant 0 : i32
    %c0_i32_0 = arith.constant 0 : i32
    %c0_i32_1 = arith.constant 0 : i32
    return %c0_i32, %c0_i32_0 : i32, i32
  }
}

</mosaic_0001>

<bundles_post_ra>
// kernel: tpu_custom_call.1
= control target key start
LH: loop header
LB: loop body
LE: loop exit
PB: predicated region body
PF: predicated region fallthrough
CT: control target
= control target key end

     0   :  { %v35_v0 = vlaneseq  ;;  %s420_s0 = inlined_call_operand.<no memory space> [shape: s32[1], index: 0, kind: input, shape index: {}]   ;;  %s421_s1 = inlined_call_operand.<no memory space> [shape: f32[1], index: 1, kind: input, shape index: {}]   ;;  %s422_s2 = inlined_call_operand.vmem [shape: f32[32,4], index: 2, kind: input, shape index: {}]   ;;  %s423_s3 = inlined_call_operand.vmem [shape: f32[4,128], index: 3, kind: input, shape index: {}]   ;;  %s424_s4 = inlined_call_operand.vmem [shape: f32[1,128], index: 4, kind: input, shape index: {}]   ;;  %s425_s5 = inlined_call_operand.vmem [shape: f32[32,8], index: 5, kind: input, shape index: {}]   ;;  %s426_s6 = inlined_call_operand.hbm [shape: f32[1,128], index: 6, kind: output, shape index: {}]  }
   0x1   :  { %v37_v1 = vstv %s420_s0 }
   0x2   :  { %13 = vsyncpa [#allocation6], 0  ;;  %v36_v2 = vand.u32 127, %v35_v0  ;;  %v39_v3 = vld [vmem:[%s425_s5] sm:$0xff]  ;;  %v41_v4 = vld [vmem:[%s425_s5 + $0x10] sm:$0xff]  ;;  %v331_v14 = vmov 0.0|0.0   ;;  %v167_v25 = vstv %s421_s1 }
   0x3   :  { %v40_v5 = vld [vmem:[%s425_s5 + $0x8] sm:$0xff]  ;;  %v42_v6 = vld [vmem:[%s425_s5 + $0x18] sm:$0xff]  ;;  %v55_v11 = vld [vmem:[%s422_s2] sm:$0xff]  ;;  %297 = vmatprep.subr.bf16.mxu0 %v331_v14  ;;  %vm30_vm1 = vcmask 24576   ;;  %vm332_vm2 = vmmov 0   ;;  %v333_v19 = vmov 0.0  }
   0x4   :  { %vm38_vm0 = vcmp.lt.s32.totalorder %v36_v2, %v37_v1  ;;  %v56_v12 = vld [vmem:[%s422_s2 + $0x8] sm:$0xff]  ;;  %v57_v13 = vld [vmem:[%s422_s2 + $0x10] sm:$0xff]  ;;  %v58_v16 = vld [vmem:[%s422_s2 + $0x18] sm:$0xff]  ;;  %289 = vmatprep.mubr.msk.f32.mxu0 %vm332_vm2, %v333_v19  ;;  %31 = vst.msk [vmem:[#allocation2] sm:$0x1] %vm30_vm1, %v333_v19  ;;  %292 = vmatprep.subr.mxu1 %v333_v19  ;;  %vm91_vm3 = vcmask 261120  }
   0x5   :  { %v43_v7 = vsel %vm38_vm0, %v39_v3, 0.0  ;;  %v45_v8 = vsel %vm38_vm0, %v41_v4, 0.0  ;;  %v44_v9 = vsel %vm38_vm0, %v40_v5, 0.0  ;;  %v46_v10 = vsel %vm38_vm0, %v42_v6, 0.0  ;;  %294 = vmatprep.mubr.msk.f32.mxu1 %vm332_vm2, %v333_v19  ;;  %v176_v24 = vld [vmem:[%s423_s3] sm:$0xf] }
   0x6   :  { %47 = vadd.xlane.f32.xlu0 %v43_v7  ;;  %51 = vadd.xlane.f32.xlu1 %v45_v8  ;;  %v298_v15 = vpack.c.bf16 %v56_v12, %v55_v11  ;;  %v301_v17 = vpack.c.bf16 %v58_v16, %v57_v13  ;;  %vm182_vm4 = vcmask 1043456   ;;  %vm178_vm5 = vcmask 31744   ;;  %v177_v32 = vld [vmem:[%s424_s4] sm:$0x1]  ;;  %s334_s3 = smov [#allocation5]  }
   0x7   :  { %293 = vmatpush3.msk.msra.mxu1 %vm182_vm4, %v176_v24  ;;  %s263_s18 = sshll.u32 %s334_s3, 4  ;;  %s264_s18 = int_to_ptr.vmem [resolvable:$true] %s263_s18 }
   0x8   :  { %299 = vmatpush3.bf16.msra.mxu0 %v298_v15  ;;  %s307_s1 = scalar_lea.vmem %s264_s18, 16  ;;  %s311_s19 = scalar_lea.vmem %s264_s18, 32 }
   0x9   :  { %300 = vmatprep.subr.bf16.mxu0 %v331_v14  ;;  %p308_p0 = scmp.ne.s32.totalorder %s264_s18, %s307_s1  ;;  %p312_p1 = scmp.lt.s32.totalorder %s264_s18, %s264_s18 }
   0xa   :  { %49 = vadd.xlane.f32.xlu0 %v44_v9  ;;  %53 = vadd.xlane.f32.xlu1 %v46_v10  ;;  %p313_p2 = scmp.lt.s32.totalorder %s311_s19, %s307_s1 }
   0xb   :  { %v165_v27 = vld [vmem:[#allocation2] sm:$0x1] }
   0xc   :  { %302 = vmatpush3.bf16.msra.mxu0 %v301_v17  ;;  %p314_p3 = por %p313_p2, %p312_p1 }
   0xe   :  { %p315_p4 = pnand %p314_p3, %p308_p0 }
  0x93   :  { %v48_v18 = vpop.xlane.xlu0 %47  ;;  %v52_v21 = vpop.xlane.xlu1 %51 }
  0x94   :  { %59 = vxpose.xlu0.b32.start [1/4] (short) (narrow) %v48_v18, 8 }
  0x97   :  { %v50_v20 = vpop.xlane.xlu0 %49  ;;  %v54_v22 = vpop.xlane.xlu1 %53 }
  0x98   :  { %60 = vxpose.xlu0.b32.cont [2/4] (short) (narrow) %v50_v20, 8 }
  0x9c   :  { %61 = vxpose.xlu0.b32.cont [3/4] (short) (narrow) %v52_v21, 8 }
  0xa0   :  { %62 = vxpose.xlu0.b32.end [4/4] (short) (narrow) %v54_v22, 8 }
 0x114   :  { %v75_v23 = vpop.trf.xlu0 }
 0x115   :  { %290 = vmatmul.mubr.msk.f32.vlgmr.msra.gmra.mrb[0].mxu0 %vm91_vm3, %v75_v23 }
 0x1e8   :  { %v161_v26 = vpop.f32.mrb[0].mxu0 }
 0x1e9   :  { %v168_v28 = vmul.f32 %v167_v25, %v161_v26  ;;  %v291_v29 = vpop.f32.mrb[1].mxu0 }
 0x1eb   :  { %v169_v30 = vadd.f32 %v168_v28, %v165_v27 }
 0x1ed   :  { %171 = vst.msk [vmem:[#allocation2] sm:$0x1] %vm30_vm1, %v169_v30 }
 0x1f4   :  { %v175_v31 = vld [vmem:[#allocation2] sm:$0x1] }
 0x1f5   :  { %295 = vmatmul.mubr.msk.f32.vlgmr.msra.gmra.mrb[0].mxu1 %vm178_vm5, %v175_v31 }
 0x2c8   :  { %v252_v33 = vpop.f32.mrb[0].mxu1 }
 0x2c9   :  { %v253_v34 = vadd.f32 %v252_v33, %v177_v32  ;;  %v296_v35 = vpop.f32.mrb[1].mxu1 }
 0x2cb   :  { %256 = vst [vmem:[#allocation5] sm:$0x1] %v253_v34 }
 0x2cc   :  { %318 = shalt.err (!%p315_p4)
}
 0x2cd   :  { %s319_s22 = scalar_lea.hbm %s426_s6, 16 }
 0x2ce   :  { %p320_p5 = scmp.ne.s32.totalorder %s426_s6, %s319_s22  ;;  %p323_p6 = scmp.lt.u32.totalorder %s319_s22, %s426_s6 }
 0x2d0   :  { %p325_p7 = pnand %p323_p6, %p320_p5 }
 0x2d2   :  { %328 = shalt.err (!%p325_p7)
}
 0x2d3   :  { %266 = dma.vmem_to_hbm [thread:$0]  %s264_s18, 16, %s426_s6, [#allocation6]  }
 0x2d4   :  { %329 = dma.done.wait [#allocation6], 16  }
 0x2d5   :  { %330 = vsyncadd [#allocation6], 4294967280 }
 0x2d6   :  { %270 = vsyncpa [#allocation6], 1 }

</bundles_post_ra>
